<compile_context>
chip_gen: v7x
topology: tpu7x:2x2x1
jax: 0.10.0
libtpu: 0.0.40
codegen_flags: <defaults>
</compile_context>

<pallas_src>
import jax
import jax.numpy as jnp
from jax.experimental import pallas as pl
from jax.experimental.pallas import tpu as pltpu


def _decoder_fused_kernel(x_ref, wih_ref, bih_ref, whh_ref, bhh_ref,
                          wout_ref, bout_ref, pred_ref):
    B, T, Z = x_ref.shape
    H = whh_ref.shape[0]
    F = wout_ref.shape[1]

    # ---- Hoisted input projection: one MXU pass covering all T steps. ----
    x2d = x_ref[...].reshape(B * T, Z)                             # [B*T, Z]
    gi_all = (jnp.dot(x2d, wih_ref[...],
                      preferred_element_type=jnp.float32)
              + bih_ref[...]).reshape(B, T, 3 * H)                 # [B, T, 3H]

    whh = whh_ref[...]                                             # [H, 3H]
    bhh = bhh_ref[...]                                             # [1, 3H]

    # ---- Recurrence: fully unrolled; only h @ Whh on the serial chain. ----
    h = jnp.zeros((B, H), jnp.float32)                             # PyTorch h0 = 0
    hs = []
    for t in range(T):                                             # static unroll
        gi = gi_all[:, t, :]                                       # [B, 3H]
        gh = jnp.dot(h, whh, preferred_element_type=jnp.float32) + bhh
        # PyTorch GRU gate order r | z | n ; n uses r * (W_hn h + b_hn).
        r = jax.nn.sigmoid(gi[:, :H] + gh[:, :H])
        z = jax.nn.sigmoid(gi[:, H:2 * H] + gh[:, H:2 * H])
        n = jnp.tanh(gi[:, 2 * H:] + r * gh[:, 2 * H:])
        h = (1.0 - z) * n + z * h
        hs.append(h)

    # ---- Deferred output Linear: one MXU pass + one slab store. ----
    h_all = jnp.stack(hs, axis=1).reshape(B * T, H)                # [B*T, H]
    pred = (jnp.dot(h_all, wout_ref[...],
                    preferred_element_type=jnp.float32)
            + bout_ref[...])                                       # [B*T, F]
    pred_ref[...] = pred.reshape(B, T, F).astype(pred_ref.dtype)   # [B, T, F]


def decoder_forward(inputs, w_ih, b_ih, w_hh, b_hh, w_out, b_out):
    """inputs: [B, T, Z] (batch_first, like PyTorch).

    Weights in PyTorch layout: w_ih [3H, Z], w_hh [3H, H], b_ih/b_hh [3H],
    w_out [F, H], b_out [F]. Returns prediction [B, T, F].
    """
    B, T, Z = inputs.shape
    H = w_hh.shape[1]
    F = w_out.shape[0]

    # One-time tiny weight relayouts (activations are NOT transposed).
    wih_t = jnp.transpose(w_ih)                      # [Z, 3H]
    whh_t = jnp.transpose(w_hh)                      # [H, 3H]
    wout_t = jnp.transpose(w_out)                    # [H, F]
    bih = b_ih.reshape(1, 3 * H)
    bhh = b_hh.reshape(1, 3 * H)
    bout = b_out.reshape(1, F)

    return pl.pallas_call(
        _decoder_fused_kernel,
        out_shape=jax.ShapeDtypeStruct((B, T, F), jnp.float32),
        grid=(1,),                                   # whole module in one kernel step
        in_specs=[
            pl.BlockSpec((B, T, Z), lambda i: (0, 0, 0)),   # full blocks, VMEM-resident
            pl.BlockSpec((Z, 3 * H), lambda i: (0, 0)),
            pl.BlockSpec((1, 3 * H), lambda i: (0, 0)),
            pl.BlockSpec((H, 3 * H), lambda i: (0, 0)),
            pl.BlockSpec((1, 3 * H), lambda i: (0, 0)),
            pl.BlockSpec((H, F), lambda i: (0, 0)),
            pl.BlockSpec((1, F), lambda i: (0, 0)),
        ],
        out_specs=pl.BlockSpec((B, T, F), lambda i: (0, 0, 0)),
        compiler_params=pltpu.CompilerParams(
            dimension_semantics=("arbitrary",)),     # recurrence is sequential
    )(inputs, wih_t, bih, whh_t, bhh, wout_t, bout)


def decoder_reference(inputs, w_ih, b_ih, w_hh, b_hh, w_out, b_out):
    """Pure-JAX reference matching torch.nn.GRU + nn.Linear semantics."""
    B, T, Z = inputs.shape
    H = w_hh.shape[1]

    def step(h, x_t):
        gi = x_t @ w_ih.T + b_ih
        gh = h @ w_hh.T + b_hh
        r = jax.nn.sigmoid(gi[:, :H] + gh[:, :H])
        z = jax.nn.sigmoid(gi[:, H:2 * H] + gh[:, H:2 * H])
        n = jnp.tanh(gi[:, 2 * H:] + r * gh[:, 2 * H:])
        h_new = (1.0 - z) * n + z * h
        return h_new, h_new

    h0 = jnp.zeros((B, H), jnp.float32)
    _, hs = jax.lax.scan(step, h0, jnp.swapaxes(inputs, 0, 1))   # [T, B, H]
    dec_out = jnp.swapaxes(hs, 0, 1)                             # [B, T, H]
    return dec_out @ w_out.T + b_out                             # [B, T, F]


def init_decoder_params(key, zdims, hidden_size, num_features):
    """Deterministic init mimicking PyTorch defaults (uniform +-1/sqrt(fan))."""
    ks = jax.random.split(key, 6)
    b_rnn = 1.0 / jnp.sqrt(hidden_size)
    w_ih = jax.random.uniform(ks[0], (3 * hidden_size, zdims), jnp.float32, -b_rnn, b_rnn)
    w_hh = jax.random.uniform(ks[1], (3 * hidden_size, hidden_size), jnp.float32, -b_rnn, b_rnn)
    b_ih = jax.random.uniform(ks[2], (3 * hidden_size,), jnp.float32, -b_rnn, b_rnn)
    b_hh = jax.random.uniform(ks[3], (3 * hidden_size,), jnp.float32, -b_rnn, b_rnn)
    b_lin = 1.0 / jnp.sqrt(hidden_size)
    w_out = jax.random.uniform(ks[4], (num_features, hidden_size), jnp.float32, -b_lin, b_lin)
    b_out = jax.random.uniform(ks[5], (num_features,), jnp.float32, -b_lin, b_lin)
    return w_ih, b_ih, w_hh, b_hh, w_out, b_out


if __name__ == "__main__":
    key = jax.random.PRNGKey(0)
    k_param, k_in = jax.random.split(key)

    TEMPORAL_WINDOW = 8     # T
    ZDIMS = 16              # GRU input size
    NUM_FEATURES = 12       # Linear output size
    HIDDEN_SIZE_REC = 32    # GRU hidden size
    BATCH = 2

    params = init_decoder_params(k_param, ZDIMS, HIDDEN_SIZE_REC, NUM_FEATURES)
    inputs = jax.random.normal(
        k_in, (BATCH, TEMPORAL_WINDOW, ZDIMS), jnp.float32)

    pred = decoder_forward(inputs, *params)
    jax.block_until_ready(pred)

    pred_ref = decoder_reference(inputs, *params)
    assert pred.shape == (BATCH, TEMPORAL_WINDOW, NUM_FEATURES)
    assert jnp.allclose(pred, pred_ref, atol=5e-3, rtol=5e-3), \
        float(jnp.max(jnp.abs(pred - pred_ref)))

    print("KERNEL_OK")
</pallas_src>

<mosaic_0001>
module attributes {stable_mosaic.version = 11 : i64} {
  func.func @_decoder_fused_kernel(%arg0: i32, %arg1: memref<2x8x16xf32, #tpu.memory_space<vmem>>, %arg2: memref<16x96xf32, #tpu.memory_space<vmem>>, %arg3: memref<1x96xf32, #tpu.memory_space<vmem>>, %arg4: memref<32x96xf32, #tpu.memory_space<vmem>>, %arg5: memref<1x96xf32, #tpu.memory_space<vmem>>, %arg6: memref<32x12xf32, #tpu.memory_space<vmem>>, %arg7: memref<1x12xf32, #tpu.memory_space<vmem>>, %arg8: memref<2x8x12xf32, #tpu.memory_space<vmem>>) attributes {dimension_semantics = [#tpu.dimension_semantics<arbitrary>], iteration_bounds = array<i64: 1>, scalar_prefetch = 0 : i64, scratch_operands = 0 : i64, tpu.core_type = #tpu.core_type<tc>, window_params = [{pipeline_mode = #tpu.pipeline_mode<synchronous>, transform_indices = @transform_0, window_bounds = array<i64: 2, 8, 16>}, {pipeline_mode = #tpu.pipeline_mode<synchronous>, transform_indices = @transform_1, window_bounds = array<i64: 16, 96>}, {pipeline_mode = #tpu.pipeline_mode<synchronous>, transform_indices = @transform_2, window_bounds = array<i64: 1, 96>}, {pipeline_mode = #tpu.pipeline_mode<synchronous>, transform_indices = @transform_3, window_bounds = array<i64: 32, 96>}, {pipeline_mode = #tpu.pipeline_mode<synchronous>, transform_indices = @transform_4, window_bounds = array<i64: 1, 96>}, {pipeline_mode = #tpu.pipeline_mode<synchronous>, transform_indices = @transform_5, window_bounds = array<i64: 32, 12>}, {pipeline_mode = #tpu.pipeline_mode<synchronous>, transform_indices = @transform_6, window_bounds = array<i64: 1, 12>}, {pipeline_mode = #tpu.pipeline_mode<synchronous>, transform_indices = @transform_7, window_bounds = array<i64: 2, 8, 12>}]} {
    %c0 = arith.constant 0 : index
    %c0_0 = arith.constant 0 : index
    %c0_1 = arith.constant 0 : index
    %0 = vector.load %arg1[%c0, %c0_0, %c0_1] : memref<2x8x16xf32, #tpu.memory_space<vmem>>, vector<2x8x16xf32>
    %1 = vector.shape_cast %0 : vector<2x8x16xf32> to vector<16x16xf32>
    %c0_2 = arith.constant 0 : index
    %c0_3 = arith.constant 0 : index
    %2 = vector.load %arg2[%c0_2, %c0_3] : memref<16x96xf32, #tpu.memory_space<vmem>>, vector<16x96xf32>
    %cst = arith.constant dense<0.000000e+00> : vector<16x96xf32>
    %3 = tpu.matmul %1, %2, %cst {dimension_numbers = #tpu.dot_dimension_numbers<[1], [0], [0], [1], [0, 0, 1, 1], [], []>} : vector<16x16xf32>, vector<16x96xf32>, vector<16x96xf32> -> vector<16x96xf32>
    %c0_4 = arith.constant 0 : index
    %c0_5 = arith.constant 0 : index
    %4 = vector.load %arg3[%c0_4, %c0_5] : memref<1x96xf32, #tpu.memory_space<vmem>>, vector<1x96xf32>
    %5 = vector.broadcast %4 : vector<1x96xf32> to vector<16x96xf32>
    %6 = arith.addf %3, %5 : vector<16x96xf32>
    %7 = vector.shape_cast %6 : vector<16x96xf32> to vector<2x8x96xf32>
    %c0_6 = arith.constant 0 : index
    %c0_7 = arith.constant 0 : index
    %8 = vector.load %arg4[%c0_6, %c0_7] : memref<32x96xf32, #tpu.memory_space<vmem>>, vector<32x96xf32>
    %c0_8 = arith.constant 0 : index
    %c0_9 = arith.constant 0 : index
    %9 = vector.load %arg5[%c0_8, %c0_9] : memref<1x96xf32, #tpu.memory_space<vmem>>, vector<1x96xf32>
    %cst_10 = arith.constant 0.000000e+00 : f32
    %10 = vector.broadcast %cst_10 : f32 to vector<2x32xf32>
    %11 = vector.extract_strided_slice %7 {offsets = [0, 0, 0], sizes = [2, 1, 96], strides = [1, 1, 1]} : vector<2x8x96xf32> to vector<2x1x96xf32>
    %12 = vector.shape_cast %11 : vector<2x1x96xf32> to vector<2x96xf32>
    %cst_11 = arith.constant dense<0.000000e+00> : vector<2x96xf32>
    %13 = tpu.matmul %10, %8, %cst_11 {dimension_numbers = #tpu.dot_dimension_numbers<[1], [0], [0], [1], [0, 0, 1, 1], [], []>} : vector<2x32xf32>, vector<32x96xf32>, vector<2x96xf32> -> vector<2x96xf32>
    %14 = vector.broadcast %9 : vector<1x96xf32> to vector<2x96xf32>
    %15 = arith.addf %13, %14 : vector<2x96xf32>
    %16 = vector.extract_strided_slice %12 {offsets = [0, 0], sizes = [2, 32], strides = [1, 1]} : vector<2x96xf32> to vector<2x32xf32>
    %17 = vector.extract_strided_slice %15 {offsets = [0, 0], sizes = [2, 32], strides = [1, 1]} : vector<2x96xf32> to vector<2x32xf32>
    %18 = arith.addf %16, %17 : vector<2x32xf32>
    %19 = arith.negf %18 : vector<2x32xf32>
    %20 = math.exp %19 : vector<2x32xf32>
    %cst_12 = arith.constant 1.000000e+00 : f32
    %21 = vector.broadcast %cst_12 : f32 to vector<2x32xf32>
    %22 = arith.addf %21, %20 : vector<2x32xf32>
    %23 = arith.divf %21, %22 : vector<2x32xf32>
    %24 = vector.extract_strided_slice %12 {offsets = [0, 32], sizes = [2, 32], strides = [1, 1]} : vector<2x96xf32> to vector<2x32xf32>
    %25 = vector.extract_strided_slice %15 {offsets = [0, 32], sizes = [2, 32], strides = [1, 1]} : vector<2x96xf32> to vector<2x32xf32>
    %26 = arith.addf %24, %25 : vector<2x32xf32>
    %27 = arith.negf %26 : vector<2x32xf32>
    %28 = math.exp %27 : vector<2x32xf32>
    %cst_13 = arith.constant 1.000000e+00 : f32
    %29 = vector.broadcast %cst_13 : f32 to vector<2x32xf32>
    %30 = arith.addf %29, %28 : vector<2x32xf32>
    %31 = arith.divf %29, %30 : vector<2x32xf32>
    %32 = vector.extract_strided_slice %12 {offsets = [0, 64], sizes = [2, 32], strides = [1, 1]} : vector<2x96xf32> to vector<2x32xf32>
    %33 = vector.extract_strided_slice %15 {offsets = [0, 64], sizes = [2, 32], strides = [1, 1]} : vector<2x96xf32> to vector<2x32xf32>
    %34 = arith.mulf %23, %33 : vector<2x32xf32>
    %35 = arith.addf %32, %34 : vector<2x32xf32>
    %36 = math.tanh %35 : vector<2x32xf32>
    %cst_14 = arith.constant 1.000000e+00 : f32
    %37 = vector.broadcast %cst_14 : f32 to vector<2x32xf32>
    %38 = arith.subf %37, %31 : vector<2x32xf32>
    %39 = arith.mulf %38, %36 : vector<2x32xf32>
    %40 = arith.mulf %31, %10 : vector<2x32xf32>
    %41 = arith.addf %39, %40 : vector<2x32xf32>
    %42 = vector.extract_strided_slice %7 {offsets = [0, 1, 0], sizes = [2, 1, 96], strides = [1, 1, 1]} : vector<2x8x96xf32> to vector<2x1x96xf32>
    %43 = vector.shape_cast %42 : vector<2x1x96xf32> to vector<2x96xf32>
    %cst_15 = arith.constant dense<0.000000e+00> : vector<2x96xf32>
    %44 = tpu.matmul %41, %8, %cst_15 {dimension_numbers = #tpu.dot_dimension_numbers<[1], [0], [0], [1], [0, 0, 1, 1], [], []>} : vector<2x32xf32>, vector<32x96xf32>, vector<2x96xf32> -> vector<2x96xf32>
    %45 = vector.broadcast %9 : vector<1x96xf32> to vector<2x96xf32>
    %46 = arith.addf %44, %45 : vector<2x96xf32>
    %47 = vector.extract_strided_slice %43 {offsets = [0, 0], sizes = [2, 32], strides = [1, 1]} : vector<2x96xf32> to vector<2x32xf32>
    %48 = vector.extract_strided_slice %46 {offsets = [0, 0], sizes = [2, 32], strides = [1, 1]} : vector<2x96xf32> to vector<2x32xf32>
    %49 = arith.addf %47, %48 : vector<2x32xf32>
    %50 = arith.negf %49 : vector<2x32xf32>
    %51 = math.exp %50 : vector<2x32xf32>
    %cst_16 = arith.constant 1.000000e+00 : f32
    %52 = vector.broadcast %cst_16 : f32 to vector<2x32xf32>
    %53 = arith.addf %52, %51 : vector<2x32xf32>
    %54 = arith.divf %52, %53 : vector<2x32xf32>
    %55 = vector.extract_strided_slice %43 {offsets = [0, 32], sizes = [2, 32], strides = [1, 1]} : vector<2x96xf32> to vector<2x32xf32>
    %56 = vector.extract_strided_slice %46 {offsets = [0, 32], sizes = [2, 32], strides = [1, 1]} : vector<2x96xf32> to vector<2x32xf32>
    %57 = arith.addf %55, %56 : vector<2x32xf32>
    %58 = arith.negf %57 : vector<2x32xf32>
    %59 = math.exp %58 : vector<2x32xf32>
    %cst_17 = arith.constant 1.000000e+00 : f32
    %60 = vector.broadcast %cst_17 : f32 to vector<2x32xf32>
    %61 = arith.addf %60, %59 : vector<2x32xf32>
    %62 = arith.divf %60, %61 : vector<2x32xf32>
    %63 = vector.extract_strided_slice %43 {offsets = [0, 64], sizes = [2, 32], strides = [1, 1]} : vector<2x96xf32> to vector<2x32xf32>
    %64 = vector.extract_strided_slice %46 {offsets = [0, 64], sizes = [2, 32], strides = [1, 1]} : vector<2x96xf32> to vector<2x32xf32>
    %65 = arith.mulf %54, %64 : vector<2x32xf32>
    %66 = arith.addf %63, %65 : vector<2x32xf32>
    %67 = math.tanh %66 : vector<2x32xf32>
    %cst_18 = arith.constant 1.000000e+00 : f32
    %68 = vector.broadcast %cst_18 : f32 to vector<2x32xf32>
    %69 = arith.subf %68, %62 : vector<2x32xf32>
    %70 = arith.mulf %69, %67 : vector<2x32xf32>
    %71 = arith.mulf %62, %41 : vector<2x32xf32>
    %72 = arith.addf %70, %71 : vector<2x32xf32>
    %73 = vector.extract_strided_slice %7 {offsets = [0, 2, 0], sizes = [2, 1, 96], strides = [1, 1, 1]} : vector<2x8x96xf32> to vector<2x1x96xf32>
    %74 = vector.shape_cast %73 : vector<2x1x96xf32> to vector<2x96xf32>
    %cst_19 = arith.constant dense<0.000000e+00> : vector<2x96xf32>
    %75 = tpu.matmul %72, %8, %cst_19 {dimension_numbers = #tpu.dot_dimension_numbers<[1], [0], [0], [1], [0, 0, 1, 1], [], []>} : vector<2x32xf32>, vector<32x96xf32>, vector<2x96xf32> -> vector<2x96xf32>
    %76 = vector.broadcast %9 : vector<1x96xf32> to vector<2x96xf32>
    %77 = arith.addf %75, %76 : vector<2x96xf32>
    %78 = vector.extract_strided_slice %74 {offsets = [0, 0], sizes = [2, 32], strides = [1, 1]} : vector<2x96xf32> to vector<2x32xf32>
    %79 = vector.extract_strided_slice %77 {offsets = [0, 0], sizes = [2, 32], strides = [1, 1]} : vector<2x96xf32> to vector<2x32xf32>
    %80 = arith.addf %78, %79 : vector<2x32xf32>
    %81 = arith.negf %80 : vector<2x32xf32>
    %82 = math.exp %81 : vector<2x32xf32>
    %cst_20 = arith.constant 1.000000e+00 : f32
    %83 = vector.broadcast %cst_20 : f32 to vector<2x32xf32>
    %84 = arith.addf %83, %82 : vector<2x32xf32>
    %85 = arith.divf %83, %84 : vector<2x32xf32>
    %86 = vector.extract_strided_slice %74 {offsets = [0, 32], sizes = [2, 32], strides = [1, 1]} : vector<2x96xf32> to vector<2x32xf32>
    %87 = vector.extract_strided_slice %77 {offsets = [0, 32], sizes = [2, 32], strides = [1, 1]} : vector<2x96xf32> to vector<2x32xf32>
    %88 = arith.addf %86, %87 : vector<2x32xf32>
    %89 = arith.negf %88 : vector<2x32xf32>
    %90 = math.exp %89 : vector<2x32xf32>
    %cst_21 = arith.constant 1.000000e+00 : f32
    %91 = vector.broadcast %cst_21 : f32 to vector<2x32xf32>
    %92 = arith.addf %91, %90 : vector<2x32xf32>
    %93 = arith.divf %91, %92 : vector<2x32xf32>
    %94 = vector.extract_strided_slice %74 {offsets = [0, 64], sizes = [2, 32], strides = [1, 1]} : vector<2x96xf32> to vector<2x32xf32>
    %95 = vector.extract_strided_slice %77 {offsets = [0, 64], sizes = [2, 32], strides = [1, 1]} : vector<2x96xf32> to vector<2x32xf32>
    %96 = arith.mulf %85, %95 : vector<2x32xf32>
    %97 = arith.addf %94, %96 : vector<2x32xf32>
    %98 = math.tanh %97 : vector<2x32xf32>
    %cst_22 = arith.constant 1.000000e+00 : f32
    %99 = vector.broadcast %cst_22 : f32 to vector<2x32xf32>
    %100 = arith.subf %99, %93 : vector<2x32xf32>
    %101 = arith.mulf %100, %98 : vector<2x32xf32>
    %102 = arith.mulf %93, %72 : vector<2x32xf32>
    %103 = arith.addf %101, %102 : vector<2x32xf32>
    %104 = vector.extract_strided_slice %7 {offsets = [0, 3, 0], sizes = [2, 1, 96], strides = [1, 1, 1]} : vector<2x8x96xf32> to vector<2x1x96xf32>
    %105 = vector.shape_cast %104 : vector<2x1x96xf32> to vector<2x96xf32>
    %cst_23 = arith.constant dense<0.000000e+00> : vector<2x96xf32>
    %106 = tpu.matmul %103, %8, %cst_23 {dimension_numbers = #tpu.dot_dimension_numbers<[1], [0], [0], [1], [0, 0, 1, 1], [], []>} : vector<2x32xf32>, vector<32x96xf32>, vector<2x96xf32> -> vector<2x96xf32>
    %107 = vector.broadcast %9 : vector<1x96xf32> to vector<2x96xf32>
    %108 = arith.addf %106, %107 : vector<2x96xf32>
    %109 = vector.extract_strided_slice %105 {offsets = [0, 0], sizes = [2, 32], strides = [1, 1]} : vector<2x96xf32> to vector<2x32xf32>
    %110 = vector.extract_strided_slice %108 {offsets = [0, 0], sizes = [2, 32], strides = [1, 1]} : vector<2x96xf32> to vector<2x32xf32>
    %111 = arith.addf %109, %110 : vector<2x32xf32>
    %112 = arith.negf %111 : vector<2x32xf32>
    %113 = math.exp %112 : vector<2x32xf32>
    %cst_24 = arith.constant 1.000000e+00 : f32
    %114 = vector.broadcast %cst_24 : f32 to vector<2x32xf32>
    %115 = arith.addf %114, %113 : vector<2x32xf32>
    %116 = arith.divf %114, %115 : vector<2x32xf32>
    %117 = vector.extract_strided_slice %105 {offsets = [0, 32], sizes = [2, 32], strides = [1, 1]} : vector<2x96xf32> to vector<2x32xf32>
    %118 = vector.extract_strided_slice %108 {offsets = [0, 32], sizes = [2, 32], strides = [1, 1]} : vector<2x96xf32> to vector<2x32xf32>
    %119 = arith.addf %117, %118 : vector<2x32xf32>
    %120 = arith.negf %119 : vector<2x32xf32>
    %121 = math.exp %120 : vector<2x32xf32>
    %cst_25 = arith.constant 1.000000e+00 : f32
    %122 = vector.broadcast %cst_25 : f32 to vector<2x32xf32>
    %123 = arith.addf %122, %121 : vector<2x32xf32>
    %124 = arith.divf %122, %123 : vector<2x32xf32>
    %125 = vector.extract_strided_slice %105 {offsets = [0, 64], sizes = [2, 32], strides = [1, 1]} : vector<2x96xf32> to vector<2x32xf32>
    %126 = vector.extract_strided_slice %108 {offsets = [0, 64], sizes = [2, 32], strides = [1, 1]} : vector<2x96xf32> to vector<2x32xf32>
    %127 = arith.mulf %116, %126 : vector<2x32xf32>
    %128 = arith.addf %125, %127 : vector<2x32xf32>
    %129 = math.tanh %128 : vector<2x32xf32>
    %cst_26 = arith.constant 1.000000e+00 : f32
    %130 = vector.broadcast %cst_26 : f32 to vector<2x32xf32>
    %131 = arith.subf %130, %124 : vector<2x32xf32>
    %132 = arith.mulf %131, %129 : vector<2x32xf32>
    %133 = arith.mulf %124, %103 : vector<2x32xf32>
    %134 = arith.addf %132, %133 : vector<2x32xf32>
    %135 = vector.extract_strided_slice %7 {offsets = [0, 4, 0], sizes = [2, 1, 96], strides = [1, 1, 1]} : vector<2x8x96xf32> to vector<2x1x96xf32>
    %136 = vector.shape_cast %135 : vector<2x1x96xf32> to vector<2x96xf32>
    %cst_27 = arith.constant dense<0.000000e+00> : vector<2x96xf32>
    %137 = tpu.matmul %134, %8, %cst_27 {dimension_numbers = #tpu.dot_dimension_numbers<[1], [0], [0], [1], [0, 0, 1, 1], [], []>} : vector<2x32xf32>, vector<32x96xf32>, vector<2x96xf32> -> vector<2x96xf32>
    %138 = vector.broadcast %9 : vector<1x96xf32> to vector<2x96xf32>
    %139 = arith.addf %137, %138 : vector<2x96xf32>
    %140 = vector.extract_strided_slice %136 {offsets = [0, 0], sizes = [2, 32], strides = [1, 1]} : vector<2x96xf32> to vector<2x32xf32>
    %141 = vector.extract_strided_slice %139 {offsets = [0, 0], sizes = [2, 32], strides = [1, 1]} : vector<2x96xf32> to vector<2x32xf32>
    %142 = arith.addf %140, %141 : vector<2x32xf32>
    %143 = arith.negf %142 : vector<2x32xf32>
    %144 = math.exp %143 : vector<2x32xf32>
    %cst_28 = arith.constant 1.000000e+00 : f32
    %145 = vector.broadcast %cst_28 : f32 to vector<2x32xf32>
    %146 = arith.addf %145, %144 : vector<2x32xf32>
    %147 = arith.divf %145, %146 : vector<2x32xf32>
    %148 = vector.extract_strided_slice %136 {offsets = [0, 32], sizes = [2, 32], strides = [1, 1]} : vector<2x96xf32> to vector<2x32xf32>
    %149 = vector.extract_strided_slice %139 {offsets = [0, 32], sizes = [2, 32], strides = [1, 1]} : vector<2x96xf32> to vector<2x32xf32>
    %150 = arith.addf %148, %149 : vector<2x32xf32>
    %151 = arith.negf %150 : vector<2x32xf32>
    %152 = math.exp %151 : vector<2x32xf32>
    %cst_29 = arith.constant 1.000000e+00 : f32
    %153 = vector.broadcast %cst_29 : f32 to vector<2x32xf32>
    %154 = arith.addf %153, %152 : vector<2x32xf32>
    %155 = arith.divf %153, %154 : vector<2x32xf32>
    %156 = vector.extract_strided_slice %136 {offsets = [0, 64], sizes = [2, 32], strides = [1, 1]} : vector<2x96xf32> to vector<2x32xf32>
    %157 = vector.extract_strided_slice %139 {offsets = [0, 64], sizes = [2, 32], strides = [1, 1]} : vector<2x96xf32> to vector<2x32xf32>
    %158 = arith.mulf %147, %157 : vector<2x32xf32>
    %159 = arith.addf %156, %158 : vector<2x32xf32>
    %160 = math.tanh %159 : vector<2x32xf32>
    %cst_30 = arith.constant 1.000000e+00 : f32
    %161 = vector.broadcast %cst_30 : f32 to vector<2x32xf32>
    %162 = arith.subf %161, %155 : vector<2x32xf32>
    %163 = arith.mulf %162, %160 : vector<2x32xf32>
    %164 = arith.mulf %155, %134 : vector<2x32xf32>
    %165 = arith.addf %163, %164 : vector<2x32xf32>
    %166 = vector.extract_strided_slice %7 {offsets = [0, 5, 0], sizes = [2, 1, 96], strides = [1, 1, 1]} : vector<2x8x96xf32> to vector<2x1x96xf32>
    %167 = vector.shape_cast %166 : vector<2x1x96xf32> to vector<2x96xf32>
    %cst_31 = arith.constant dense<0.000000e+00> : vector<2x96xf32>
    %168 = tpu.matmul %165, %8, %cst_31 {dimension_numbers = #tpu.dot_dimension_numbers<[1], [0], [0], [1], [0, 0, 1, 1], [], []>} : vector<2x32xf32>, vector<32x96xf32>, vector<2x96xf32> -> vector<2x96xf32>
    %169 = vector.broadcast %9 : vector<1x96xf32> to vector<2x96xf32>
    %170 = arith.addf %168, %169 : vector<2x96xf32>
    %171 = vector.extract_strided_slice %167 {offsets = [0, 0], sizes = [2, 32], strides = [1, 1]} : vector<2x96xf32> to vector<2x32xf32>
    %172 = vector.extract_strided_slice %170 {offsets = [0, 0], sizes = [2, 32], strides = [1, 1]} : vector<2x96xf32> to vector<2x32xf32>
    %173 = arith.addf %171, %172 : vector<2x32xf32>
    %174 = arith.negf %173 : vector<2x32xf32>
    %175 = math.exp %174 : vector<2x32xf32>
    %cst_32 = arith.constant 1.000000e+00 : f32
    %176 = vector.broadcast %cst_32 : f32 to vector<2x32xf32>
    %177 = arith.addf %176, %175 : vector<2x32xf32>
    %178 = arith.divf %176, %177 : vector<2x32xf32>
    %179 = vector.extract_strided_slice %167 {offsets = [0, 32], sizes = [2, 32], strides = [1, 1]} : vector<2x96xf32> to vector<2x32xf32>
    %180 = vector.extract_strided_slice %170 {offsets = [0, 32], sizes = [2, 32], strides = [1, 1]} : vector<2x96xf32> to vector<2x32xf32>
    %181 = arith.addf %179, %180 : vector<2x32xf32>
    %182 = arith.negf %181 : vector<2x32xf32>
    %183 = math.exp %182 : vector<2x32xf32>
    %cst_33 = arith.constant 1.000000e+00 : f32
    %184 = vector.broadcast %cst_33 : f32 to vector<2x32xf32>
    %185 = arith.addf %184, %183 : vector<2x32xf32>
    %186 = arith.divf %184, %185 : vector<2x32xf32>
    %187 = vector.extract_strided_slice %167 {offsets = [0, 64], sizes = [2, 32], strides = [1, 1]} : vector<2x96xf32> to vector<2x32xf32>
    %188 = vector.extract_strided_slice %170 {offsets = [0, 64], sizes = [2, 32], strides = [1, 1]} : vector<2x96xf32> to vector<2x32xf32>
    %189 = arith.mulf %178, %188 : vector<2x32xf32>
    %190 = arith.addf %187, %189 : vector<2x32xf32>
    %191 = math.tanh %190 : vector<2x32xf32>
    %cst_34 = arith.constant 1.000000e+00 : f32
    %192 = vector.broadcast %cst_34 : f32 to vector<2x32xf32>
    %193 = arith.subf %192, %186 : vector<2x32xf32>
    %194 = arith.mulf %193, %191 : vector<2x32xf32>
    %195 = arith.mulf %186, %165 : vector<2x32xf32>
    %196 = arith.addf %194, %195 : vector<2x32xf32>
    %197 = vector.extract_strided_slice %7 {offsets = [0, 6, 0], sizes = [2, 1, 96], strides = [1, 1, 1]} : vector<2x8x96xf32> to vector<2x1x96xf32>
    %198 = vector.shape_cast %197 : vector<2x1x96xf32> to vector<2x96xf32>
    %cst_35 = arith.constant dense<0.000000e+00> : vector<2x96xf32>
    %199 = tpu.matmul %196, %8, %cst_35 {dimension_numbers = #tpu.dot_dimension_numbers<[1], [0], [0], [1], [0, 0, 1, 1], [], []>} : vector<2x32xf32>, vector<32x96xf32>, vector<2x96xf32> -> vector<2x96xf32>
    %200 = vector.broadcast %9 : vector<1x96xf32> to vector<2x96xf32>
    %201 = arith.addf %199, %200 : vector<2x96xf32>
    %202 = vector.extract_strided_slice %198 {offsets = [0, 0], sizes = [2, 32], strides = [1, 1]} : vector<2x96xf32> to vector<2x32xf32>
    %203 = vector.extract_strided_slice %201 {offsets = [0, 0], sizes = [2, 32], strides = [1, 1]} : vector<2x96xf32> to vector<2x32xf32>
    %204 = arith.addf %202, %203 : vector<2x32xf32>
    %205 = arith.negf %204 : vector<2x32xf32>
    %206 = math.exp %205 : vector<2x32xf32>
    %cst_36 = arith.constant 1.000000e+00 : f32
    %207 = vector.broadcast %cst_36 : f32 to vector<2x32xf32>
    %208 = arith.addf %207, %206 : vector<2x32xf32>
    %209 = arith.divf %207, %208 : vector<2x32xf32>
    %210 = vector.extract_strided_slice %198 {offsets = [0, 32], sizes = [2, 32], strides = [1, 1]} : vector<2x96xf32> to vector<2x32xf32>
    %211 = vector.extract_strided_slice %201 {offsets = [0, 32], sizes = [2, 32], strides = [1, 1]} : vector<2x96xf32> to vector<2x32xf32>
    %212 = arith.addf %210, %211 : vector<2x32xf32>
    %213 = arith.negf %212 : vector<2x32xf32>
    %214 = math.exp %213 : vector<2x32xf32>
    %cst_37 = arith.constant 1.000000e+00 : f32
    %215 = vector.broadcast %cst_37 : f32 to vector<2x32xf32>
    %216 = arith.addf %215, %214 : vector<2x32xf32>
    %217 = arith.divf %215, %216 : vector<2x32xf32>
    %218 = vector.extract_strided_slice %198 {offsets = [0, 64], sizes = [2, 32], strides = [1, 1]} : vector<2x96xf32> to vector<2x32xf32>
    %219 = vector.extract_strided_slice %201 {offsets = [0, 64], sizes = [2, 32], strides = [1, 1]} : vector<2x96xf32> to vector<2x32xf32>
    %220 = arith.mulf %209, %219 : vector<2x32xf32>
    %221 = arith.addf %218, %220 : vector<2x32xf32>
    %222 = math.tanh %221 : vector<2x32xf32>
    %cst_38 = arith.constant 1.000000e+00 : f32
    %223 = vector.broadcast %cst_38 : f32 to vector<2x32xf32>
    %224 = arith.subf %223, %217 : vector<2x32xf32>
    %225 = arith.mulf %224, %222 : vector<2x32xf32>
    %226 = arith.mulf %217, %196 : vector<2x32xf32>
    %227 = arith.addf %225, %226 : vector<2x32xf32>
    %228 = vector.extract_strided_slice %7 {offsets = [0, 7, 0], sizes = [2, 1, 96], strides = [1, 1, 1]} : vector<2x8x96xf32> to vector<2x1x96xf32>
    %229 = vector.shape_cast %228 : vector<2x1x96xf32> to vector<2x96xf32>
    %cst_39 = arith.constant dense<0.000000e+00> : vector<2x96xf32>
    %230 = tpu.matmul %227, %8, %cst_39 {dimension_numbers = #tpu.dot_dimension_numbers<[1], [0], [0], [1], [0, 0, 1, 1], [], []>} : vector<2x32xf32>, vector<32x96xf32>, vector<2x96xf32> -> vector<2x96xf32>
    %231 = vector.broadcast %9 : vector<1x96xf32> to vector<2x96xf32>
    %232 = arith.addf %230, %231 : vector<2x96xf32>
    %233 = vector.extract_strided_slice %229 {offsets = [0, 0], sizes = [2, 32], strides = [1, 1]} : vector<2x96xf32> to vector<2x32xf32>
    %234 = vector.extract_strided_slice %232 {offsets = [0, 0], sizes = [2, 32], strides = [1, 1]} : vector<2x96xf32> to vector<2x32xf32>
    %235 = arith.addf %233, %234 : vector<2x32xf32>
    %236 = arith.negf %235 : vector<2x32xf32>
    %237 = math.exp %236 : vector<2x32xf32>
    %cst_40 = arith.constant 1.000000e+00 : f32
    %238 = vector.broadcast %cst_40 : f32 to vector<2x32xf32>
    %239 = arith.addf %238, %237 : vector<2x32xf32>
    %240 = arith.divf %238, %239 : vector<2x32xf32>
    %241 = vector.extract_strided_slice %229 {offsets = [0, 32], sizes = [2, 32], strides = [1, 1]} : vector<2x96xf32> to vector<2x32xf32>
    %242 = vector.extract_strided_slice %232 {offsets = [0, 32], sizes = [2, 32], strides = [1, 1]} : vector<2x96xf32> to vector<2x32xf32>
    %243 = arith.addf %241, %242 : vector<2x32xf32>
    %244 = arith.negf %243 : vector<2x32xf32>
    %245 = math.exp %244 : vector<2x32xf32>
    %cst_41 = arith.constant 1.000000e+00 : f32
    %246 = vector.broadcast %cst_41 : f32 to vector<2x32xf32>
    %247 = arith.addf %246, %245 : vector<2x32xf32>
    %248 = arith.divf %246, %247 : vector<2x32xf32>
    %249 = vector.extract_strided_slice %229 {offsets = [0, 64], sizes = [2, 32], strides = [1, 1]} : vector<2x96xf32> to vector<2x32xf32>
    %250 = vector.extract_strided_slice %232 {offsets = [0, 64], sizes = [2, 32], strides = [1, 1]} : vector<2x96xf32> to vector<2x32xf32>
    %251 = arith.mulf %240, %250 : vector<2x32xf32>
    %252 = arith.addf %249, %251 : vector<2x32xf32>
    %253 = math.tanh %252 : vector<2x32xf32>
    %cst_42 = arith.constant 1.000000e+00 : f32
    %254 = vector.broadcast %cst_42 : f32 to vector<2x32xf32>
    %255 = arith.subf %254, %248 : vector<2x32xf32>
    %256 = arith.mulf %255, %253 : vector<2x32xf32>
    %257 = arith.mulf %248, %227 : vector<2x32xf32>
    %258 = arith.addf %256, %257 : vector<2x32xf32>
    %259 = vector.shape_cast %41 : vector<2x32xf32> to vector<2x1x32xf32>
    %260 = vector.shape_cast %72 : vector<2x32xf32> to vector<2x1x32xf32>
    %261 = vector.shape_cast %103 : vector<2x32xf32> to vector<2x1x32xf32>
    %262 = vector.shape_cast %134 : vector<2x32xf32> to vector<2x1x32xf32>
    %263 = vector.shape_cast %165 : vector<2x32xf32> to vector<2x1x32xf32>
    %264 = vector.shape_cast %196 : vector<2x32xf32> to vector<2x1x32xf32>
    %265 = vector.shape_cast %227 : vector<2x32xf32> to vector<2x1x32xf32>
    %266 = vector.shape_cast %258 : vector<2x32xf32> to vector<2x1x32xf32>
    %267 = tpu.concatenate %259, %260, %261, %262, %263, %264, %265, %266 in 1 : vector<2x1x32xf32>, vector<2x1x32xf32>, vector<2x1x32xf32>, vector<2x1x32xf32>, vector<2x1x32xf32>, vector<2x1x32xf32>, vector<2x1x32xf32>, vector<2x1x32xf32> -> vector<2x8x32xf32>
    %268 = vector.shape_cast %267 : vector<2x8x32xf32> to vector<16x32xf32>
    %c0_43 = arith.constant 0 : index
    %c0_44 = arith.constant 0 : index
    %269 = vector.load %arg6[%c0_43, %c0_44] : memref<32x12xf32, #tpu.memory_space<vmem>>, vector<32x12xf32>
    %cst_45 = arith.constant dense<0.000000e+00> : vector<16x12xf32>
    %270 = tpu.matmul %268, %269, %cst_45 {dimension_numbers = #tpu.dot_dimension_numbers<[1], [0], [0], [1], [0, 0, 1, 1], [], []>} : vector<16x32xf32>, vector<32x12xf32>, vector<16x12xf32> -> vector<16x12xf32>
    %c0_46 = arith.constant 0 : index
    %c0_47 = arith.constant 0 : index
    %271 = vector.load %arg7[%c0_46, %c0_47] : memref<1x12xf32, #tpu.memory_space<vmem>>, vector<1x12xf32>
    %272 = vector.broadcast %271 : vector<1x12xf32> to vector<16x12xf32>
    %273 = arith.addf %270, %272 : vector<16x12xf32>
    %274 = vector.shape_cast %273 : vector<16x12xf32> to vector<2x8x12xf32>
    %c0_48 = arith.constant 0 : index
    %c0_49 = arith.constant 0 : index
    %c0_50 = arith.constant 0 : index
    %275 = vector.load %arg8[%c0_48, %c0_49, %c0_50] : memref<2x8x12xf32, #tpu.memory_space<vmem>>, vector<2x8x12xf32>
    tpu.vector_store %arg8[%c0_48, %c0_49, %c0_50], %274 {strides = array<i32>} : memref<2x8x12xf32, #tpu.memory_space<vmem>>, vector<2x8x12xf32>,
    return
  }
  func.func @transform_0(%arg0: i32) -> (i32, i32, i32) {
    %c0_i32 = arith.constant 0 : i32
    %c0_i32_0 = arith.constant 0 : i32
    %c0_i32_1 = arith.constant 0 : i32
    %c0_i32_2 = arith.constant 0 : i32
    return %c0_i32, %c0_i32_0, %c0_i32_1 : i32, i32, i32
  }
  func.func @transform_1(%arg0: i32) -> (i32, i32) {
    %c0_i32 = arith.constant 0 : i32
    %c0_i32_0 = arith.constant 0 : i32
    %c0_i32_1 = arith.constant 0 : i32
    return %c0_i32, %c0_i32_0 : i32, i32
  }
  func.func @transform_2(%arg0: i32) -> (i32, i32) {
    %c0_i32 = arith.constant 0 : i32
    %c0_i32_0 = arith.constant 0 : i32
    %c0_i32_1 = arith.constant 0 : i32
    return %c0_i32, %c0_i32_0 : i32, i32
  }
  func.func @transform_3(%arg0: i32) -> (i32, i32) {
    %c0_i32 = arith.constant 0 : i32
    %c0_i32_0 = arith.constant 0 : i32
    %c0_i32_1 = arith.constant 0 : i32
    return %c0_i32, %c0_i32_0 : i32, i32
  }
  func.func @transform_4(%arg0: i32) -> (i32, i32) {
    %c0_i32 = arith.constant 0 : i32
    %c0_i32_0 = arith.constant 0 : i32
    %c0_i32_1 = arith.constant 0 : i32
    return %c0_i32, %c0_i32_0 : i32, i32
  }
  func.func @transform_5(%arg0: i32) -> (i32, i32) {
    %c0_i32 = arith.constant 0 : i32
    %c0_i32_0 = arith.constant 0 : i32
    %c0_i32_1 = arith.constant 0 : i32
    return %c0_i32, %c0_i32_0 : i32, i32
  }
  func.func @transform_6(%arg0: i32) -> (i32, i32) {
    %c0_i32 = arith.constant 0 : i32
    %c0_i32_0 = arith.constant 0 : i32
    %c0_i32_1 = arith.constant 0 : i32
    return %c0_i32, %c0_i32_0 : i32, i32
  }
  func.func @transform_7(%arg0: i32) -> (i32, i32, i32) {
    %c0_i32 = arith.constant 0 : i32
    %c0_i32_0 = arith.constant 0 : i32
    %c0_i32_1 = arith.constant 0 : i32
    %c0_i32_2 = arith.constant 0 : i32
    return %c0_i32, %c0_i32_0, %c0_i32_1 : i32, i32, i32
  }
}

</mosaic_0001>

<bundles_post_ra>
// kernel: tpu_custom_call.1
= control target key start
LH: loop header
LB: loop body
LE: loop exit
PB: predicated region body
PF: predicated region fallthrough
CT: control target
= control target key end

     0   :  { %12 = vsyncpa [#allocation3], 0  ;;  %s2112_s0 = inlined_call_operand.vmem [shape: f32[2,8,16], index: 0, kind: input, shape index: {}]   ;;  %s2113_s1 = inlined_call_operand.hbm [shape: f32[16,96], index: 1, kind: input, shape index: {}]   ;;  %s2114_s2 = inlined_call_operand.vmem [shape: f32[1,96], index: 2, kind: input, shape index: {}]   ;;  %s2115_s3 = inlined_call_operand.vmem [shape: f32[32,96], index: 3, kind: input, shape index: {}]   ;;  %s2116_s4 = inlined_call_operand.vmem [shape: f32[1,96], index: 4, kind: input, shape index: {}]   ;;  %s2117_s5 = inlined_call_operand.vmem [shape: f32[32,12], index: 5, kind: input, shape index: {}]   ;;  %s2118_s6 = inlined_call_operand.vmem [shape: f32[1,12], index: 6, kind: input, shape index: {}]   ;;  %s2119_s7 = inlined_call_operand.hbm [shape: f32[2,8,12], index: 7, kind: output, shape index: {}]  }
   0x1   :  { %13 = vsyncpa [#allocation4], 0  ;;  %s1772_s24 = smov [#allocation2]   ;;  %s1724_s28 = scalar_lea.hbm %s2113_s1, 256 }
   0x2   :  { %s21_s25 = sshll.u32 %s1772_s24, 4  ;;  %p1725_p0 = scmp.ne.s32.totalorder %s2113_s1, %s1724_s28  ;;  %s22_s25 = int_to_ptr.vmem [resolvable:$true] %s21_s25 }
   0x3   :  { %p1728_p1 = scmp.lt.u32.totalorder %s1724_s28, %s2113_s1 }
   0x5   :  { %p1730_p2 = pnand %p1728_p1, %p1725_p0 }
   0x7   :  { %1733 = shalt.err (!%p1730_p2)
}
   0x8   :  { %s1734_s10 = scalar_lea.vmem %s22_s25, 256  ;;  %p1739_p4 = scmp.lt.s32.totalorder %s22_s25, %s22_s25 }
   0x9   :  { %p1735_p3 = scmp.ne.s32.totalorder %s22_s25, %s1734_s10  ;;  %p1740_p5 = scmp.lt.s32.totalorder %s1734_s10, %s1734_s10 }
   0xb   :  { %p1741_p6 = por %p1740_p5, %p1739_p4 }
   0xd   :  { %p1742_p7 = pnand %p1741_p6, %p1735_p3 }
   0xf   :  { %1745 = shalt.err (!%p1742_p7)
}
  0x10   :  { %s1773_s11 = smov 128   ;;  %s1774_s12 = smov 8  }
  0x11   :  { %27 = dma.hbm_to_vmem [thread:$0]  %s2113_s1, 256, %s22_s25, [#allocation3], %s1773_s11, %s1773_s11, %s1774_s12  }
  0x12   :  { %1768 = dma.done.wait [#allocation3], 256  }
  0x13   :  { %1769 = vsyncadd [#allocation3], 4294967040  ;;  %v1775_v0 = vmov 0.0|0.0   ;;  %vm1776_vm0 = vmmov 0   ;;  %v1777_v1 = vmov 0.0   ;;  %v134_v2 = vld [vmem:[%s2115_s3] sm:$0xff] }
  0x14   :  { %1563 = vmatprep.subr.bf16.mxu1 %v1775_v0  ;;  %1468 = vmatprep.mubr.msk.f32.mxu1 %vm1776_vm0, %v1777_v1  ;;  %v135_v3 = vld [vmem:[%s2115_s3 + $0x8] sm:$0xff]  ;;  %v43_v4 = vld [vmem:[#allocation2] sm:$0xff]  ;;  %vm52_vm1 = vcmask 130048   ;;  %v136_v7 = vld [vmem:[%s2115_s3 + $0x10] sm:$0xff]  ;;  %s1778_s26 = smov 64   ;;  %vm276_vm2 = vcmask 1041409  }
  0x15   :  { %v1845_v5 = vpack.c.bf16 %v135_v3, %v134_v2  ;;  %v44_v6 = vld [vmem:[#allocation2 + $0x8] sm:$0xff]  ;;  %v137_v8 = vld [vmem:[%s2115_s3 + $0x18] sm:$0xff]  ;;  %v41_v10 = vld [vmem:[%s2112_s0] sm:$0xff]  ;;  %vm145_vm3 = vcmask 261120   ;;  %vm1236_vm4 = vcmask 1040384   ;;  %vm1239_vm5 = vcmask 1041408  }
  0x16   :  { %v1559_v9 = vpack.c.bf16 %v44_v6, %v43_v4  ;;  %v1857_v11 = vpack.c.bf16 %v137_v8, %v136_v7  ;;  %1457 = vmatprep.mubr.msk.f32.mxu0 %vm52_vm1, %v41_v10  ;;  %v42_v12 = vld [vmem:[%s2112_s0 + $0x8] sm:$0xff]  ;;  %v1884_v14 = vld [vmem:[%s2116_s4] ss:$0 sm:$0xff]  ;;  %vm1242_vm6 = vcmask 1042432   ;;  %vm1245_vm7 = vcmask 1043456   ;;  %s1780_s16 = smov [#allocation5]  }
  0x17   :  { %1565 = vmatpush3.bf16.msra.mxu1 %v1845_v5  ;;  %v1373_v20 = vld [vmem:[%s2114_s2] ss:$0 sm:$0xff]  ;;  %s1779_s2 = smov 96   ;;  %vm1248_vm8 = vcmask 1044480   ;;  %vm1251_vm9 = vcmask 1045504   ;;  %vm1254_vm10 = vcmask 1046528  }
  0x18   :  { %1560 = vmatprep.subr.bf16.mxu0 %v1559_v9  ;;  %1566 = vmatprep.subr.bf16.mxu1 %v1775_v0  ;;  %s1361_s17 = sshll.u32 %s1780_s16, 4  ;;  %vm1353_vm11 = vcmask 97280   ;;  %s1362_s17 = int_to_ptr.vmem [resolvable:$true] %s1361_s17 }
  0x19   :  { %1562 = vmatpush3.bf16.msra.mxu0 %v1559_v9  ;;  %s1746_s18 = scalar_lea.vmem %s1362_s17, 256  ;;  %p1751_p9 = scmp.lt.s32.totalorder %s1362_s17, %s1362_s17 }
  0x1a   :  { %1569 = vmatprep.subr.bf16.mxu0 %v1775_v0  ;;  %p1747_p8 = scmp.ne.s32.totalorder %s1362_s17, %s1746_s18  ;;  %p1752_p10 = scmp.lt.s32.totalorder %s1746_s18, %s1746_s18 }
  0x1b   :  { %1568 = vmatpush3.bf16.msra.mxu1 %v1857_v11 }
  0x1c   :  { %1458 = vmatmul.mubr.msk.f32.vlgmr.msra.gmra.mrb[0].mxu0 %vm52_vm1, %v42_v12  ;;  %1575 = vmatprep.subr.bf16.mxu1 %v1775_v0  ;;  %p1753_p11 = por %p1752_p10, %p1751_p9 }
  0x1d   :  { %1571 = vmatpush3.bf16.msra.mxu0 %v1845_v5  ;;  %1479 = vmatprep.mubr.msk.f32.mxu0 %vm1776_vm0, %v1777_v1 }
  0x1e   :  { %1469 = vmatmul.mubr.f32.vlgmr.msra.gmra.mrb[0].mxu1 %v1777_v1  ;;  %1572 = vmatprep.subr.bf16.mxu0 %v1775_v0  ;;  %p1754_p12 = pnand %p1753_p11, %p1747_p8 }
  0x1f   :  { %1577 = vmatpush3.bf16.msra.mxu1 %v1845_v5  ;;  %1490 = vmatprep.mubr.msk.f32.mxu1 %vm1776_vm0, %v1777_v1 }
  0x20   :  { %1578 = vmatprep.subr.bf16.mxu1 %v1775_v0 }
  0x21   :  { %1574 = vmatpush3.bf16.msra.mxu0 %v1857_v11 }
  0x22   :  { %1581 = vmatprep.subr.bf16.mxu0 %v1775_v0 }
  0x23   :  { %1580 = vmatpush3.bf16.msra.mxu1 %v1857_v11 }
  0x24   :  { %1587 = vmatprep.subr.bf16.mxu1 %v1775_v0 }
  0xef   :  { %v1459_v13 = vpop.f32.mrb[0].mxu0 }
  0xf0   :  { %v125_v15 = vpop.f32.mrb[1].mxu0  ;;  %v1892_v21 = vadd.f32 %v1459_v13, %v1373_v20 }
  0xf1   :  { %v215_v16 = vpop.f32.mrb[0].mxu1  ;;  %v1894_v22 = vadd.f32 %v1373_v20, %v125_v15 }
  0xf2   :  { %v216_v17 = vadd.f32 %v1884_v14, %v215_v16  ;;  %v1470_v18 = vpop.f32.mrb[1].mxu1 }
  0xf4   :  { %v220_v19 = vrot.slane %v216_v17, 1  ;;  %v223_v24 = vadd.f32 %v216_v17, %v1894_v22 }
  0xf6   :  { %239 = vrot.lane.b32.xlu0 %v220_v19, %s1778_s26  ;;  %v224_v23 = vadd.f32 %v220_v19, %v1892_v21  ;;  %v1377_v26 = vmul.f32 -1.442695, %v223_v24 }
  0xf8   :  { %v1378_v25 = vmul.f32 -1.442695, %v224_v23 }
  0xfa   :  { %237 = vrot.lane.b32.xlu0 %v216_v17, %s1778_s26  ;;  %1628 = vpow2.f32 %v1378_v25 }
  0xfb   :  { %1630 = vpow2.f32 %v1377_v26 }
 0x104   :  { %v1629_v27 = vpop.eup %1628 }
 0x105   :  { %v232_v28 = vadd.f32 1.0, %v1629_v27  ;;  %v1631_v29 = vpop.eup %1630 }
 0x106   :  { %v231_v30 = vadd.f32 1.0, %v1631_v29 }
 0x107   :  { %1632 = vrcp.f32 %v232_v28 }
 0x108   :  { %1634 = vrcp.f32 %v231_v30 }
 0x111   :  { %v1633_v31 = vpop.eup %1632 }
 0x112   :  { %v1635_v34 = vpop.eup %1634  ;;  %v258_v43 = vsub.f32 1.0, %v1633_v31  ;;  %v270_v45 = vmul.f32 0.0, %v1633_v31 }
 0x113   :  { %v257_v48 = vsub.f32 1.0, %v1635_v34  ;;  %v269_v50 = vmul.f32 0.0, %v1635_v34 }
 0x168   :  { %v240_v32 = vpop.permute.xlu0 %239 }
 0x169   :  { %v244_v33 = vmul.f32 %v1633_v31, %v240_v32 }
 0x16b   :  { %249 = vrot.lane.b32.xlu1 %v244_v33, %s1778_s26 }
 0x16c   :  { %v238_v35 = vpop.permute.xlu0 %237 }
 0x16d   :  { %v243_v36 = vmul.f32 %v1635_v34, %v238_v35 }
 0x16f   :  { %247 = vrot.lane.b32.xlu1 %v243_v36, %s1778_s26 }
 0x1dd   :  { %v250_v37 = vpop.permute.xlu1 %249 }
 0x1de   :  { %v254_v38 = vadd.f32 %v250_v37, %v1892_v21 }
 0x1e0   :  { %1636 = vtanh.f32 %v254_v38 }
 0x1e1   :  { %v248_v39 = vpop.permute.xlu1 %247 }
 0x1e2   :  { %v253_v40 = vadd.f32 %v248_v39, %v1894_v22 }
 0x1e4   :  { %1638 = vtanh.f32 %v253_v40 }
 0x1ea   :  { %v1637_v41 = vpop.eup %1636 }
 0x1eb   :  { %263 = vrot.lane.b32.xlu0 %v1637_v41, %s1779_s2 }
 0x1ee   :  { %v1639_v42 = vpop.eup %1638 }
 0x1ef   :  { %261 = vrot.lane.b32.xlu1 %v1639_v42, %s1779_s2 }
 0x25d   :  { %v264_v44 = vpop.permute.xlu0 %263 }
 0x25e   :  { %v268_v46 = vmul.f32 %v264_v44, %v258_v43 }
 0x260   :  { %v1904_v47 = vadd.f32 %v270_v45, %v268_v46 }
 0x261   :  { %v262_v49 = vpop.permute.xlu1 %261 }
 0x262   :  { %v267_v51 = vmul.f32 %v262_v49, %v257_v48  ;;  %v275_v52 = vrot.slane %v1904_v47, 7 }
 0x264   :  { %v1907_v53 = vadd.f32 %v269_v50, %v267_v51 }
 0x266   :  { %v277_v54 = vsel %vm276_vm2, %v275_v52, %v1907_v53  ;;  %v402_v26 = vrot.slane %v1907_v53, 7 }
 0x267   :  { %278 = vrot.lane.b32.xlu0 %v277_v54, %s1779_s2 }
 0x2d9   :  { %v279_v55 = vpop.permute.xlu0 %278 }
 0x2da   :  { %1480 = vmatmul.mubr.msk.f32.vlgmr.msra.gmra.mrb[2].mxu0 %vm145_vm3, %v279_v55 }
 0x2db   :  { %1583 = vmatpush3.bf16.msra.mxu0 %v1845_v5  ;;  %1501 = vmatprep.mubr.msk.f32.mxu0 %vm1776_vm0, %v1777_v1 }
 0x2dc   :  { %1584 = vmatprep.subr.bf16.mxu0 %v1775_v0 }
 0x2df   :  { %1586 = vmatpush3.bf16.msra.mxu0 %v1857_v11 }
 0x2e0   :  { %1593 = vmatprep.subr.bf16.mxu0 %v1775_v0 }
 0x3ad   :  { %v348_v56 = vpop.f32.mrb[2].mxu0 }
 0x3ae   :  { %v349_v57 = vadd.f32 %v1884_v14, %v348_v56  ;;  %v1481_v58 = vpop.f32.mrb[3].mxu0 }
 0x3b0   :  { %372 = vrot.lane.b32.xlu0 %v349_v57, %s1778_s26  ;;  %v353_v59 = vrot.slane %v349_v57, 7  ;;  %v357_v60 = vadd.f32 %v349_v57, %v1892_v21 }
 0x3b2   :  { %370 = vrot.lane.b32.xlu1 %v353_v59, %s1778_s26  ;;  %v356_v61 = vadd.f32 %v353_v59, %v1894_v22  ;;  %v1381_v62 = vmul.f32 -1.442695, %v357_v60 }
 0x3b4   :  { %v1380_v63 = vmul.f32 -1.442695, %v356_v61  ;;  %1640 = vpow2.f32 %v1381_v62 }
 0x3b6   :  { %1642 = vpow2.f32 %v1380_v63 }
 0x3be   :  { %v1641_v2 = vpop.eup %1640 }
 0x3bf   :  { %v365_v4 = vadd.f32 1.0, %v1641_v2 }
 0x3c0   :  { %v1643_v3 = vpop.eup %1642 }
 0x3c1   :  { %v364_v6 = vadd.f32 1.0, %v1643_v3  ;;  %1644 = vrcp.f32 %v365_v4 }
 0x3c3   :  { %1646 = vrcp.f32 %v364_v6 }
 0x3cb   :  { %v1645_v7 = vpop.eup %1644 }
 0x3cc   :  { %v391_v24 = vsub.f32 1.0, %v1645_v7  ;;  %v406_v31 = vmul.f32 %v1645_v7, %v275_v52 }
 0x3cd   :  { %v1647_v10 = vpop.eup %1646 }
 0x3ce   :  { %v390_v25 = vsub.f32 1.0, %v1647_v10  ;;  %v405_v29 = vmul.f32 %v1647_v10, %v402_v26 }
 0x422   :  { %v373_v8 = vpop.permute.xlu0 %372 }
 0x423   :  { %v377_v9 = vmul.f32 %v1645_v7, %v373_v8 }
 0x424   :  { %v371_v12 = vpop.permute.xlu1 %370 }
 0x425   :  { %v376_v13 = vmul.f32 %v1647_v10, %v371_v12  ;;  %382 = vrot.lane.b32.xlu0 %v377_v9, %s1778_s26 }
 0x427   :  { %380 = vrot.lane.b32.xlu1 %v376_v13, %s1778_s26 }
 0x497   :  { %v383_v15 = vpop.permute.xlu0 %382 }
 0x498   :  { %v387_v16 = vadd.f32 %v383_v15, %v1892_v21 }
 0x499   :  { %v381_v17 = vpop.permute.xlu1 %380 }
 0x49a   :  { %1648 = vtanh.f32 %v387_v16  ;;  %v386_v18 = vadd.f32 %v381_v17, %v1894_v22 }
 0x49c   :  { %1650 = vtanh.f32 %v386_v18 }
 0x4a4   :  { %v1649_v19 = vpop.eup %1648 }
 0x4a5   :  { %396 = vrot.lane.b32.xlu0 %v1649_v19, %s1779_s2 }
 0x4a6   :  { %v1651_v20 = vpop.eup %1650 }
 0x4a7   :  { %394 = vrot.lane.b32.xlu1 %v1651_v20, %s1779_s2 }
 0x517   :  { %v397_v23 = vpop.permute.xlu0 %396 }
 0x518   :  { %v401_v28 = vmul.f32 %v397_v23, %v391_v24 }
 0x519   :  { %v395_v27 = vpop.permute.xlu1 %394 }
 0x51a   :  { %v400_v30 = vmul.f32 %v395_v27, %v390_v25  ;;  %v408_v33 = vadd.f32 %v406_v31, %v401_v28 }
 0x51c   :  { %v1931_v32 = vadd.f32 %v405_v29, %v400_v30  ;;  %v539_v3 = vrot.slane %v408_v33, 7  ;;  %v1238_v16 = vsel %vm1236_vm4, %v1904_v47, %v408_v33 }
 0x51e   :  { %v411_v34 = vrot.slane %v1931_v32, 1  ;;  %v538_v7 = vrot.slane %v1931_v32, 7  ;;  %v1237_v18 = vsel %vm1236_vm4, %v1907_v53, %v1931_v32 }
 0x520   :  { %v412_v35 = vsel %vm276_vm2, %v408_v33, %v411_v34 }
 0x521   :  { %413 = vrot.lane.b32.xlu1 %v412_v35, %s1779_s2 }
 0x593   :  { %v414_v36 = vpop.permute.xlu1 %413 }
 0x594   :  { %1491 = vmatmul.mubr.msk.f32.vlgmr.msra.gmra.mrb[2].mxu1 %vm145_vm3, %v414_v36 }
 0x595   :  { %1589 = vmatpush3.bf16.msra.mxu1 %v1845_v5  ;;  %1512 = vmatprep.mubr.msk.f32.mxu1 %vm1776_vm0, %v1777_v1 }
 0x596   :  { %1590 = vmatprep.subr.bf16.mxu1 %v1775_v0 }
 0x599   :  { %1592 = vmatpush3.bf16.msra.mxu1 %v1857_v11 }
 0x59a   :  { %1599 = vmatprep.subr.bf16.mxu1 %v1775_v0 }
 0x667   :  { %v483_v37 = vpop.f32.mrb[2].mxu1 }
 0x668   :  { %v484_v38 = vadd.f32 %v1884_v14, %v483_v37  ;;  %v1492_v39 = vpop.f32.mrb[3].mxu1 }
 0x66a   :  { %v488_v40 = vrot.slane %v484_v38, 6  ;;  %v489_v41 = vrot.slane %v484_v38, 7 }
 0x66c   :  { %508 = vrot.lane.b32.xlu1 %v489_v41, %s1778_s26  ;;  %506 = vrot.lane.b32.xlu0 %v488_v40, %s1778_s26  ;;  %v492_v42 = vadd.f32 %v488_v40, %v1894_v22  ;;  %v493_v43 = vadd.f32 %v489_v41, %v1892_v21 }
 0x66e   :  { %v1383_v44 = vmul.f32 -1.442695, %v492_v42  ;;  %v1384_v45 = vmul.f32 -1.442695, %v493_v43 }
 0x670   :  { %1652 = vpow2.f32 %v1383_v44 }
 0x671   :  { %1654 = vpow2.f32 %v1384_v45 }
 0x67a   :  { %v1653_v46 = vpop.eup %1652 }
 0x67b   :  { %v1655_v48 = vpop.eup %1654  ;;  %v500_v49 = vadd.f32 1.0, %v1653_v46 }
 0x67c   :  { %v501_v50 = vadd.f32 1.0, %v1655_v48 }
 0x67d   :  { %1656 = vrcp.f32 %v500_v49 }
 0x67e   :  { %1658 = vrcp.f32 %v501_v50 }
 0x687   :  { %v1657_v51 = vpop.eup %1656 }
 0x688   :  { %v1659_v52 = vpop.eup %1658  ;;  %v526_v6 = vsub.f32 1.0, %v1657_v51  ;;  %v542_v12 = vmul.f32 %v1657_v51, %v538_v7 }
 0x689   :  { %v527_v2 = vsub.f32 1.0, %v1659_v52  ;;  %v543_v8 = vmul.f32 %v1659_v52, %v539_v3 }
 0x6de   :  { %v509_v54 = vpop.permute.xlu1 %508  ;;  %v507_v55 = vpop.permute.xlu0 %506 }
 0x6df   :  { %v513_v56 = vmul.f32 %v1659_v52, %v509_v54  ;;  %v512_v57 = vmul.f32 %v1657_v51, %v507_v55 }
 0x6e1   :  { %518 = vrot.lane.b32.xlu1 %v513_v56, %s1778_s26  ;;  %516 = vrot.lane.b32.xlu0 %v512_v57, %s1778_s26 }
 0x753   :  { %v519_v58 = vpop.permute.xlu1 %518  ;;  %v517_v59 = vpop.permute.xlu0 %516 }
 0x754   :  { %v523_v60 = vadd.f32 %v519_v58, %v1892_v21  ;;  %v522_v61 = vadd.f32 %v517_v59, %v1894_v22 }
 0x756   :  { %1660 = vtanh.f32 %v523_v60 }
 0x757   :  { %1662 = vtanh.f32 %v522_v61 }
 0x760   :  { %v1661_v62 = vpop.eup %1660 }
 0x761   :  { %v1663_v63 = vpop.eup %1662  ;;  %532 = vrot.lane.b32.xlu1 %v1661_v62, %s1779_s2 }
 0x762   :  { %530 = vrot.lane.b32.xlu0 %v1663_v63, %s1779_s2 }
 0x7d3   :  { %v533_v4 = vpop.permute.xlu1 %532 }
 0x7d4   :  { %v537_v9 = vmul.f32 %v533_v4, %v527_v2  ;;  %v531_v10 = vpop.permute.xlu0 %530 }
 0x7d5   :  { %v536_v13 = vmul.f32 %v531_v10, %v526_v6 }
 0x7d6   :  { %v545_v15 = vadd.f32 %v543_v8, %v537_v9 }
 0x7d7   :  { %v544_v17 = vadd.f32 %v542_v12, %v536_v13 }
 0x7d8   :  { %v1958_v19 = vsel %vm1239_vm5, %v1238_v16, %v545_v15  ;;  %v549_v20 = vrot.slane %v545_v15, 1  ;;  %v677_v52 = vrot.slane %v545_v15, 7 }
 0x7d9   :  { %v1960_v23 = vsel %vm1239_vm5, %v1237_v18, %v544_v17  ;;  %v548_v24 = vrot.slane %v544_v17, 2  ;;  %v676_v56 = vrot.slane %v544_v17, 7 }
 0x7db   :  { %v550_v25 = vsel %vm276_vm2, %v549_v20, %v548_v24 }
 0x7dc   :  { %551 = vrot.lane.b32.xlu0 %v550_v25, %s1779_s2 }
 0x84e   :  { %v552_v26 = vpop.permute.xlu0 %551 }
 0x84f   :  { %1502 = vmatmul.mubr.msk.f32.vlgmr.msra.gmra.mrb[4].mxu0 %vm145_vm3, %v552_v26 }
 0x850   :  { %1595 = vmatpush3.bf16.msra.mxu0 %v1845_v5  ;;  %1523 = vmatprep.mubr.msk.f32.mxu0 %vm1776_vm0, %v1777_v1 }
 0x851   :  { %1596 = vmatprep.subr.bf16.mxu0 %v1775_v0 }
 0x854   :  { %1598 = vmatpush3.bf16.msra.mxu0 %v1857_v11 }
 0x855   :  { %1605 = vmatprep.subr.bf16.mxu0 %v1775_v0 }
 0x922   :  { %v621_v47 = vpop.f32.mrb[4].mxu0 }
 0x923   :  { %v622_v53 = vadd.f32 %v1884_v14, %v621_v47  ;;  %v1503_v27 = vpop.f32.mrb[5].mxu0 }
 0x925   :  { %v626_v28 = vrot.slane %v622_v53, 5  ;;  %v627_v29 = vrot.slane %v622_v53, 6 }
 0x927   :  { %646 = vrot.lane.b32.xlu0 %v627_v29, %s1778_s26  ;;  %644 = vrot.lane.b32.xlu1 %v626_v28, %s1778_s26  ;;  %v630_v30 = vadd.f32 %v626_v28, %v1894_v22  ;;  %v631_v31 = vadd.f32 %v627_v29, %v1892_v21 }
 0x929   :  { %v1386_v32 = vmul.f32 -1.442695, %v630_v30  ;;  %v1387_v33 = vmul.f32 -1.442695, %v631_v31 }
 0x92b   :  { %1664 = vpow2.f32 %v1386_v32 }
 0x92c   :  { %1666 = vpow2.f32 %v1387_v33 }
 0x935   :  { %v1665_v34 = vpop.eup %1664 }
 0x936   :  { %v1667_v35 = vpop.eup %1666  ;;  %v638_v36 = vadd.f32 1.0, %v1665_v34 }
 0x937   :  { %v639_v37 = vadd.f32 1.0, %v1667_v35 }
 0x938   :  { %1668 = vrcp.f32 %v638_v36 }
 0x939   :  { %1670 = vrcp.f32 %v639_v37 }
 0x942   :  { %v1669_v38 = vpop.eup %1668 }
 0x943   :  { %v1671_v39 = vpop.eup %1670  ;;  %v664_v55 = vsub.f32 1.0, %v1669_v38  ;;  %v680_v60 = vmul.f32 %v1669_v38, %v676_v56 }
 0x944   :  { %v665_v51 = vsub.f32 1.0, %v1671_v39  ;;  %v681_v57 = vmul.f32 %v1671_v39, %v677_v52 }
 0x999   :  { %v647_v40 = vpop.permute.xlu0 %646  ;;  %v645_v41 = vpop.permute.xlu1 %644 }
 0x99a   :  { %v651_v42 = vmul.f32 %v1671_v39, %v647_v40  ;;  %v650_v43 = vmul.f32 %v1669_v38, %v645_v41 }
 0x99c   :  { %656 = vrot.lane.b32.xlu0 %v651_v42, %s1778_s26  ;;  %654 = vrot.lane.b32.xlu1 %v650_v43, %s1778_s26 }
 0xa0e   :  { %v657_v44 = vpop.permute.xlu0 %656  ;;  %v655_v45 = vpop.permute.xlu1 %654 }
 0xa0f   :  { %v661_v46 = vadd.f32 %v657_v44, %v1892_v21  ;;  %v660_v48 = vadd.f32 %v655_v45, %v1894_v22 }
 0xa11   :  { %1672 = vtanh.f32 %v661_v46 }
 0xa12   :  { %1674 = vtanh.f32 %v660_v48 }
 0xa1b   :  { %v1673_v49 = vpop.eup %1672 }
 0xa1c   :  { %v1675_v50 = vpop.eup %1674  ;;  %670 = vrot.lane.b32.xlu0 %v1673_v49, %s1779_s2 }
 0xa1d   :  { %668 = vrot.lane.b32.xlu1 %v1675_v50, %s1779_s2 }
 0xa8e   :  { %v671_v54 = vpop.permute.xlu0 %670 }
 0xa8f   :  { %v675_v58 = vmul.f32 %v671_v54, %v665_v51  ;;  %v669_v59 = vpop.permute.xlu1 %668 }
 0xa90   :  { %v674_v61 = vmul.f32 %v669_v59, %v664_v55 }
 0xa91   :  { %v683_v62 = vadd.f32 %v681_v57, %v675_v58 }
 0xa92   :  { %v682_v63 = vadd.f32 %v680_v60, %v674_v61 }
 0xa93   :  { %v1983_v2 = vsel %vm1242_vm6, %v1958_v19, %v683_v62  ;;  %v687_v3 = vrot.slane %v683_v62, 2  ;;  %v815_v37 = vrot.slane %v683_v62, 7 }
 0xa94   :  { %v1986_v4 = vsel %vm1242_vm6, %v1960_v23, %v682_v63  ;;  %v686_v6 = vrot.slane %v682_v63, 3  ;;  %v814_v40 = vrot.slane %v682_v63, 7 }
 0xa96   :  { %v688_v7 = vsel %vm276_vm2, %v687_v3, %v686_v6 }
 0xa97   :  { %689 = vrot.lane.b32.xlu1 %v688_v7, %s1779_s2 }
 0xb09   :  { %v690_v8 = vpop.permute.xlu1 %689 }
 0xb0a   :  { %1513 = vmatmul.mubr.msk.f32.vlgmr.msra.gmra.mrb[4].mxu1 %vm145_vm3, %v690_v8 }
 0xb0b   :  { %1601 = vmatpush3.bf16.msra.mxu1 %v1845_v5  ;;  %1534 = vmatprep.mubr.msk.f32.mxu1 %vm1776_vm0, %v1777_v1 }
 0xb0c   :  { %1602 = vmatprep.subr.bf16.mxu1 %v1775_v0 }
 0xb0f   :  { %1604 = vmatpush3.bf16.msra.mxu1 %v1857_v11 }
 0xbdd   :  { %v759_v9 = vpop.f32.mrb[4].mxu1 }
 0xbde   :  { %v760_v10 = vadd.f32 %v1884_v14, %v759_v9  ;;  %v1514_v12 = vpop.f32.mrb[5].mxu1 }
 0xbe0   :  { %v764_v13 = vrot.slane %v760_v10, 4  ;;  %v765_v15 = vrot.slane %v760_v10, 5 }
 0xbe2   :  { %784 = vrot.lane.b32.xlu1 %v765_v15, %s1778_s26  ;;  %782 = vrot.lane.b32.xlu0 %v764_v13, %s1778_s26  ;;  %v768_v16 = vadd.f32 %v764_v13, %v1894_v22  ;;  %v769_v17 = vadd.f32 %v765_v15, %v1892_v21 }
 0xbe4   :  { %v1389_v18 = vmul.f32 -1.442695, %v768_v16  ;;  %v1390_v19 = vmul.f32 -1.442695, %v769_v17 }
 0xbe6   :  { %1676 = vpow2.f32 %v1389_v18 }
 0xbe7   :  { %1678 = vpow2.f32 %v1390_v19 }
 0xbf0   :  { %v1677_v20 = vpop.eup %1676 }
 0xbf1   :  { %v1679_v23 = vpop.eup %1678  ;;  %v776_v24 = vadd.f32 1.0, %v1677_v20 }
 0xbf2   :  { %v777_v25 = vadd.f32 1.0, %v1679_v23 }
 0xbf3   :  { %1680 = vrcp.f32 %v776_v24 }
 0xbf4   :  { %1682 = vrcp.f32 %v777_v25 }
 0xbfd   :  { %v1681_v26 = vpop.eup %1680 }
 0xbfe   :  { %v1683_v47 = vpop.eup %1682  ;;  %v802_v39 = vsub.f32 1.0, %v1681_v26  ;;  %v818_v44 = vmul.f32 %v1681_v26, %v814_v40 }
 0xbff   :  { %v803_v36 = vsub.f32 1.0, %v1683_v47  ;;  %v819_v41 = vmul.f32 %v1683_v47, %v815_v37 }
 0xc54   :  { %v785_v53 = vpop.permute.xlu1 %784  ;;  %v783_v27 = vpop.permute.xlu0 %782 }
 0xc55   :  { %v789_v28 = vmul.f32 %v1683_v47, %v785_v53  ;;  %v788_v29 = vmul.f32 %v1681_v26, %v783_v27 }
 0xc57   :  { %794 = vrot.lane.b32.xlu1 %v789_v28, %s1778_s26  ;;  %792 = vrot.lane.b32.xlu0 %v788_v29, %s1778_s26 }
 0xcc9   :  { %v795_v30 = vpop.permute.xlu1 %794  ;;  %v793_v31 = vpop.permute.xlu0 %792 }
 0xcca   :  { %v799_v32 = vadd.f32 %v795_v30, %v1892_v21  ;;  %v798_v33 = vadd.f32 %v793_v31, %v1894_v22 }
 0xccc   :  { %1684 = vtanh.f32 %v799_v32 }
 0xccd   :  { %1686 = vtanh.f32 %v798_v33 }
 0xcd6   :  { %v1685_v34 = vpop.eup %1684 }
 0xcd7   :  { %v1687_v35 = vpop.eup %1686  ;;  %808 = vrot.lane.b32.xlu1 %v1685_v34, %s1779_s2 }
 0xcd8   :  { %806 = vrot.lane.b32.xlu0 %v1687_v35, %s1779_s2 }
 0xd49   :  { %v809_v38 = vpop.permute.xlu1 %808 }
 0xd4a   :  { %v813_v42 = vmul.f32 %v809_v38, %v803_v36  ;;  %v807_v43 = vpop.permute.xlu0 %806 }
 0xd4b   :  { %v812_v45 = vmul.f32 %v807_v43, %v802_v39 }
 0xd4c   :  { %v821_v46 = vadd.f32 %v819_v41, %v813_v42 }
 0xd4d   :  { %v820_v48 = vadd.f32 %v818_v44, %v812_v45 }
 0xd4e   :  { %v2008_v49 = vsel %vm1245_vm7, %v1983_v2, %v821_v46  ;;  %v825_v50 = vrot.slane %v821_v46, 3  ;;  %v953_v19 = vrot.slane %v821_v46, 7 }
 0xd4f   :  { %v2011_v51 = vsel %vm1245_vm7, %v1986_v4, %v820_v48  ;;  %v824_v52 = vrot.slane %v820_v48, 4  ;;  %v952_v24 = vrot.slane %v820_v48, 7 }
 0xd51   :  { %v826_v54 = vsel %vm276_vm2, %v825_v50, %v824_v52 }
 0xd52   :  { %827 = vrot.lane.b32.xlu0 %v826_v54, %s1779_s2 }
 0xdc4   :  { %v828_v55 = vpop.permute.xlu0 %827 }
 0xdc5   :  { %1524 = vmatmul.mubr.msk.f32.vlgmr.msra.gmra.mrb[6].mxu0 %vm145_vm3, %v828_v55 }
 0xdc6   :  { %1607 = vmatpush3.bf16.msra.mxu0 %v1845_v5  ;;  %1545 = vmatprep.mubr.msk.f32.mxu0 %vm1776_vm0, %v1777_v1 }
 0xdc7   :  { %1608 = vmatprep.subr.bf16.mxu0 %v1775_v0 }
 0xdca   :  { %1610 = vmatpush3.bf16.msra.mxu0 %v1857_v11 }
 0xe98   :  { %v897_v56 = vpop.f32.mrb[6].mxu0 }
 0xe99   :  { %v898_v57 = vadd.f32 %v1884_v14, %v897_v56  ;;  %v1525_v58 = vpop.f32.mrb[7].mxu0 }
 0xe9b   :  { %v902_v59 = vrot.slane %v898_v57, 3  ;;  %v903_v60 = vrot.slane %v898_v57, 4 }
 0xe9d   :  { %922 = vrot.lane.b32.xlu0 %v903_v60, %s1778_s26  ;;  %920 = vrot.lane.b32.xlu1 %v902_v59, %s1778_s26  ;;  %v906_v61 = vadd.f32 %v902_v59, %v1894_v22  ;;  %v907_v5 = vadd.f32 %v903_v60, %v1892_v21 }
 0xe9f   :  { %v1392_v62 = vmul.f32 -1.442695, %v906_v61  ;;  %v1393_v1 = vmul.f32 -1.442695, %v907_v5 }
 0xea1   :  { %1688 = vpow2.f32 %v1392_v62 }
 0xea2   :  { %1690 = vpow2.f32 %v1393_v1 }
 0xeab   :  { %v1689_v0 = vpop.eup %1688 }
 0xeac   :  { %v1691_v11 = vpop.eup %1690  ;;  %v914_v63 = vadd.f32 1.0, %v1689_v0 }
 0xead   :  { %v915_v2 = vadd.f32 1.0, %v1691_v11 }
 0xeae   :  { %1692 = vrcp.f32 %v914_v63 }
 0xeaf   :  { %1694 = vrcp.f32 %v915_v2 }
 0xeb8   :  { %v1693_v3 = vpop.eup %1692 }
 0xeb9   :  { %v1695_v4 = vpop.eup %1694  ;;  %v940_v23 = vsub.f32 1.0, %v1693_v3  ;;  %v956_v53 = vmul.f32 %v1693_v3, %v952_v24 }
 0xeba   :  { %v941_v18 = vsub.f32 1.0, %v1695_v4  ;;  %v957_v25 = vmul.f32 %v1695_v4, %v953_v19 }
 0xf0f   :  { %v923_v6 = vpop.permute.xlu0 %922  ;;  %v921_v7 = vpop.permute.xlu1 %920 }
 0xf10   :  { %v927_v8 = vmul.f32 %v1695_v4, %v923_v6  ;;  %v926_v9 = vmul.f32 %v1693_v3, %v921_v7 }
 0xf12   :  { %932 = vrot.lane.b32.xlu0 %v927_v8, %s1778_s26  ;;  %930 = vrot.lane.b32.xlu1 %v926_v9, %s1778_s26 }
 0xf84   :  { %v933_v10 = vpop.permute.xlu0 %932  ;;  %v931_v12 = vpop.permute.xlu1 %930 }
 0xf85   :  { %v937_v13 = vadd.f32 %v933_v10, %v1892_v21  ;;  %v936_v15 = vadd.f32 %v931_v12, %v1894_v22 }
 0xf87   :  { %1696 = vtanh.f32 %v937_v13 }
 0xf88   :  { %1698 = vtanh.f32 %v936_v15 }
 0xf91   :  { %v1697_v16 = vpop.eup %1696 }
 0xf92   :  { %v1699_v17 = vpop.eup %1698  ;;  %946 = vrot.lane.b32.xlu0 %v1697_v16, %s1779_s2 }
 0xf93   :  { %944 = vrot.lane.b32.xlu1 %v1699_v17, %s1779_s2 }
0x1004   :  { %v947_v20 = vpop.permute.xlu0 %946 }
0x1005   :  { %v951_v26 = vmul.f32 %v947_v20, %v941_v18  ;;  %v945_v47 = vpop.permute.xlu1 %944 }
0x1006   :  { %v950_v27 = vmul.f32 %v945_v47, %v940_v23 }
0x1007   :  { %v959_v28 = vadd.f32 %v957_v25, %v951_v26 }
0x1008   :  { %v958_v29 = vadd.f32 %v956_v53, %v950_v27 }
0x1009   :  { %v963_v30 = vrot.slane %v959_v28, 4  ;;  %v1250_v31 = vsel %vm1248_vm8, %v2008_v49, %v959_v28  ;;  %v1091_v1 = vrot.slane %v959_v28, 7 }
0x100a   :  { %v962_v32 = vrot.slane %v958_v29, 5  ;;  %v1249_v33 = vsel %vm1248_vm8, %v2011_v51, %v958_v29  ;;  %v1090_v63 = vrot.slane %v958_v29, 7 }
0x100c   :  { %v964_v34 = vsel %vm276_vm2, %v963_v30, %v962_v32 }
0x100d   :  { %965 = vrot.lane.b32.xlu1 %v964_v34, %s1779_s2 }
0x107f   :  { %v966_v35 = vpop.permute.xlu1 %965 }
0x1080   :  { %1535 = vmatmul.mubr.msk.f32.vlgmr.msra.gmra.mrb[6].mxu1 %vm145_vm3, %v966_v35 }
0x1153   :  { %v1035_v36 = vpop.f32.mrb[6].mxu1 }
0x1154   :  { %v1036_v37 = vadd.f32 %v1884_v14, %v1035_v36  ;;  %v1536_v38 = vpop.f32.mrb[7].mxu1 }
0x1156   :  { %v1040_v39 = vrot.slane %v1036_v37, 2  ;;  %v1041_v40 = vrot.slane %v1036_v37, 3 }
0x1158   :  { %1060 = vrot.lane.b32.xlu1 %v1041_v40, %s1778_s26  ;;  %1058 = vrot.lane.b32.xlu0 %v1040_v39, %s1778_s26  ;;  %v1044_v41 = vadd.f32 %v1040_v39, %v1894_v22  ;;  %v1045_v42 = vadd.f32 %v1041_v40, %v1892_v21  ;;  %v1257_v40 = vld [vmem:[%s2117_s5] sm:$0xff] }
0x115a   :  { %v1395_v43 = vmul.f32 -1.442695, %v1044_v41  ;;  %v1396_v44 = vmul.f32 -1.442695, %v1045_v42  ;;  %v1258_v41 = vld [vmem:[%s2117_s5 + $0x8] sm:$0xff]  ;;  %v1259_v42 = vld [vmem:[%s2117_s5 + $0x10] sm:$0xff] }
0x115c   :  { %1700 = vpow2.f32 %v1395_v43  ;;  %v1611_v43 = vpack.c.bf16 %v1258_v41, %v1257_v40 }
0x115d   :  { %1702 = vpow2.f32 %v1396_v44 }
0x115e   :  { %1612 = vmatprep.subr.bf16.mxu1 %v1611_v43 }
0x115f   :  { %1614 = vmatpush3.bf16.msra.mxu1 %v1611_v43 }
0x1166   :  { %v1701_v45 = vpop.eup %1700 }
0x1167   :  { %v1703_v46 = vpop.eup %1702  ;;  %v1052_v48 = vadd.f32 1.0, %v1701_v45 }
0x1168   :  { %v1053_v49 = vadd.f32 1.0, %v1703_v46 }
0x1169   :  { %1704 = vrcp.f32 %v1052_v48 }
0x116a   :  { %1706 = vrcp.f32 %v1053_v49 }
0x1173   :  { %v1705_v50 = vpop.eup %1704 }
0x1174   :  { %v1707_v51 = vpop.eup %1706  ;;  %v1078_v11 = vsub.f32 1.0, %v1705_v50  ;;  %v1094_v6 = vmul.f32 %v1705_v50, %v1090_v63 }
0x1175   :  { %v1079_v62 = vsub.f32 1.0, %v1707_v51  ;;  %v1095_v2 = vmul.f32 %v1707_v51, %v1091_v1  ;;  %v1400_v1 = vld [vmem:[%s2118_s6] ss:$0 sm:$0xff] }
0x11ca   :  { %v1061_v52 = vpop.permute.xlu1 %1060  ;;  %v1059_v54 = vpop.permute.xlu0 %1058 }
0x11cb   :  { %v1065_v55 = vmul.f32 %v1707_v51, %v1061_v52  ;;  %v1064_v56 = vmul.f32 %v1705_v50, %v1059_v54 }
0x11cd   :  { %1070 = vrot.lane.b32.xlu1 %v1065_v55, %s1778_s26  ;;  %1068 = vrot.lane.b32.xlu0 %v1064_v56, %s1778_s26 }
0x123f   :  { %v1071_v57 = vpop.permute.xlu1 %1070  ;;  %v1069_v58 = vpop.permute.xlu0 %1068 }
0x1240   :  { %v1075_v59 = vadd.f32 %v1071_v57, %v1892_v21  ;;  %v1074_v60 = vadd.f32 %v1069_v58, %v1894_v22 }
0x1242   :  { %1708 = vtanh.f32 %v1075_v59 }
0x1243   :  { %1710 = vtanh.f32 %v1074_v60 }
0x124c   :  { %v1709_v61 = vpop.eup %1708 }
0x124d   :  { %v1711_v5 = vpop.eup %1710  ;;  %1084 = vrot.lane.b32.xlu1 %v1709_v61, %s1779_s2 }
0x124e   :  { %1082 = vrot.lane.b32.xlu0 %v1711_v5, %s1779_s2 }
0x12bf   :  { %v1085_v0 = vpop.permute.xlu1 %1084 }
0x12c0   :  { %v1089_v3 = vmul.f32 %v1085_v0, %v1079_v62  ;;  %v1083_v4 = vpop.permute.xlu0 %1082 }
0x12c1   :  { %v1088_v7 = vmul.f32 %v1083_v4, %v1078_v11 }
0x12c2   :  { %v2048_v8 = vadd.f32 %v1095_v2, %v1089_v3 }
0x12c3   :  { %v2050_v9 = vadd.f32 %v1094_v6, %v1088_v7 }
0x12c4   :  { %v1101_v10 = vrot.slane %v2048_v8, 5  ;;  %v2054_v12 = vsel %vm1251_vm9, %v1250_v31, %v2048_v8  ;;  %v1229_v48 = vrot.slane %v2048_v8, 7 }
0x12c5   :  { %v1100_v13 = vrot.slane %v2050_v9, 6  ;;  %v2058_v15 = vsel %vm1251_vm9, %v1249_v33, %v2050_v9  ;;  %v1228_v51 = vrot.slane %v2050_v9, 7 }
0x12c7   :  { %v1102_v16 = vsel %vm276_vm2, %v1101_v10, %v1100_v13 }
0x12c8   :  { %1103 = vrot.lane.b32.xlu0 %v1102_v16, %s1779_s2 }
0x133a   :  { %v1104_v17 = vpop.permute.xlu0 %1103 }
0x133b   :  { %1546 = vmatmul.mubr.msk.f32.vlgmr.msra.gmra.mrb[8].mxu0 %vm145_vm3, %v1104_v17 }
0x140e   :  { %v1173_v18 = vpop.f32.mrb[8].mxu0 }
0x140f   :  { %v1174_v19 = vadd.f32 %v1884_v14, %v1173_v18  ;;  %v1547_v20 = vpop.f32.mrb[9].mxu0 }
0x1411   :  { %v1178_v23 = vrot.slane %v1174_v19, 1  ;;  %v1179_v24 = vrot.slane %v1174_v19, 2 }
0x1413   :  { %1198 = vrot.lane.b32.xlu0 %v1179_v24, %s1778_s26  ;;  %1196 = vrot.lane.b32.xlu1 %v1178_v23, %s1778_s26  ;;  %v1182_v25 = vadd.f32 %v1178_v23, %v1894_v22  ;;  %v1183_v26 = vadd.f32 %v1179_v24, %v1892_v21 }
0x1415   :  { %v1398_v47 = vmul.f32 -1.442695, %v1182_v25  ;;  %v1399_v53 = vmul.f32 -1.442695, %v1183_v26 }
0x1417   :  { %1712 = vpow2.f32 %v1398_v47 }
0x1418   :  { %1714 = vpow2.f32 %v1399_v53 }
0x1421   :  { %v1713_v27 = vpop.eup %1712 }
0x1422   :  { %v1715_v28 = vpop.eup %1714  ;;  %v1190_v29 = vadd.f32 1.0, %v1713_v27 }
0x1423   :  { %v1191_v30 = vadd.f32 1.0, %v1715_v28 }
0x1424   :  { %1716 = vrcp.f32 %v1190_v29 }
0x1425   :  { %1718 = vrcp.f32 %v1191_v30 }
0x142e   :  { %v1717_v14 = vpop.eup %1716 }
0x142f   :  { %v1719_v31 = vpop.eup %1718  ;;  %v1216_v50 = vsub.f32 1.0, %v1717_v14  ;;  %v1232_v56 = vmul.f32 %v1717_v14, %v1228_v51 }
0x1430   :  { %v1217_v46 = vsub.f32 1.0, %v1719_v31  ;;  %v1233_v52 = vmul.f32 %v1719_v31, %v1229_v48 }
0x1485   :  { %v1199_v32 = vpop.permute.xlu0 %1198  ;;  %v1197_v33 = vpop.permute.xlu1 %1196 }
0x1486   :  { %v1203_v34 = vmul.f32 %v1719_v31, %v1199_v32  ;;  %v1202_v35 = vmul.f32 %v1717_v14, %v1197_v33 }
0x1488   :  { %1208 = vrot.lane.b32.xlu0 %v1203_v34, %s1778_s26  ;;  %1206 = vrot.lane.b32.xlu1 %v1202_v35, %s1778_s26 }
0x14fa   :  { %v1209_v36 = vpop.permute.xlu0 %1208  ;;  %v1207_v37 = vpop.permute.xlu1 %1206 }
0x14fb   :  { %v1213_v38 = vadd.f32 %v1209_v36, %v1892_v21  ;;  %v1212_v39 = vadd.f32 %v1207_v37, %v1894_v22  ;;  %v1260_v21 = vld [vmem:[%s2117_s5 + $0x18] sm:$0xff] }
0x14fc   :  { %v1615_v22 = vpack.c.bf16 %v1260_v21, %v1259_v42 }
0x14fd   :  { %1720 = vtanh.f32 %v1213_v38 }
0x14fe   :  { %1722 = vtanh.f32 %v1212_v39  ;;  %1616 = vmatprep.subr.bf16.mxu1 %v1615_v22 }
0x14ff   :  { %1618 = vmatpush3.bf16.msra.mxu1 %v1615_v22 }
0x1507   :  { %v1721_v44 = vpop.eup %1720 }
0x1508   :  { %v1723_v45 = vpop.eup %1722  ;;  %1222 = vrot.lane.b32.xlu0 %v1721_v44, %s1779_s2 }
0x1509   :  { %1220 = vrot.lane.b32.xlu1 %v1723_v45, %s1779_s2 }
0x157a   :  { %v1223_v49 = vpop.permute.xlu0 %1222 }
0x157b   :  { %v1227_v54 = vmul.f32 %v1223_v49, %v1217_v46  ;;  %v1221_v55 = vpop.permute.xlu1 %1220 }
0x157c   :  { %v1226_v57 = vmul.f32 %v1221_v55, %v1216_v50 }
0x157d   :  { %v1235_v58 = vadd.f32 %v1233_v52, %v1227_v54 }
0x157e   :  { %v1234_v59 = vadd.f32 %v1232_v56, %v1226_v57 }
0x157f   :  { %v1256_v60 = vsel %vm1254_vm10, %v2054_v12, %v1235_v58 }
0x1580   :  { %1272 = vrot.lane.b32.xlu0 %v1256_v60, %s1779_s2  ;;  %v1255_v61 = vsel %vm1254_vm10, %v2058_v15, %v1234_v59 }
0x1581   :  { %1270 = vrot.lane.b32.xlu1 %v1255_v61, %s1779_s2 }
0x15f2   :  { %v1273_v5 = vpop.permute.xlu0 %1272 }
0x15f3   :  { %v1271_v62 = vpop.permute.xlu1 %1270 }
0x15f4   :  { %1556 = vmatprep.mubr.msk.f32.mxu1 %vm145_vm3, %v1271_v62 }
0x15f5   :  { %1557 = vmatmul.mubr.msk.f32.vlgmr.msra.gmra.mrb[8].mxu1 %vm145_vm3, %v1273_v5 }
0x16c8   :  { %v1558_v0 = vpop.f32.mrb[8].mxu1 }
0x16c9   :  { %v1350_v11 = vadd.f32 %v1558_v0, %v1400_v1  ;;  %v1344_v63 = vpop.f32.mrb[9].mxu1 }
0x16ca   :  { %v1345_v2 = vadd.f32 %v1400_v1, %v1344_v63 }
0x16cb   :  { %1355 = vst.msk [vmem:[#allocation5 + $0x8] sm:$0xff] %vm1353_vm11, %v1350_v11 }
0x16cc   :  { %1354 = vst.msk [vmem:[#allocation5] sm:$0xff] %vm1353_vm11, %v1345_v2 }
0x16cd   :  { %1757 = shalt.err (!%p1754_p12)
}
0x16ce   :  { %s1758_s6 = scalar_lea.hbm %s2119_s7, 256 }
0x16cf   :  { %p1759_p13 = scmp.ne.s32.totalorder %s2119_s7, %s1758_s6  ;;  %p1762_p0 = scmp.lt.u32.totalorder %s1758_s6, %s2119_s7 }
0x16d1   :  { %p1764_p1 = pnand %p1762_p0, %p1759_p13 }
0x16d3   :  { %1767 = shalt.err (!%p1764_p1)
}
0x16d4   :  { %1367 = dma.vmem_to_hbm [thread:$0]  %s1362_s17, 256, %s2119_s7, [#allocation4], %s1773_s11, %s1773_s11, %s1774_s12  }
0x16d5   :  { %1770 = dma.done.wait [#allocation4], 256  }
0x16d6   :  { %1771 = vsyncadd [#allocation4], 4294967040 }
0x16d7   :  { %1371 = vsyncpa [#allocation3], 1 }
0x16d8   :  { %1372 = vsyncpa [#allocation4], 1 }

</bundles_post_ra>
